<compile_context>
chip_gen: v7x
topology: tpu7x:2x2x1
jax: 0.10.0
libtpu: 0.0.40
codegen_flags: <defaults>
</compile_context>

<pallas_src>
import functools

import jax
import jax.numpy as jnp
from jax.experimental import pallas as pl
from jax.experimental.pallas import tpu as pltpu


def _tree_attn_kernel(hid_ref, enc_ref, mask_ref,
                      wh_ref, we_ref, ba_ref, v_ref,
                      out_ref, *, compute_dtype):
    S, TB, I = enc_ref.shape
    Hd = wh_ref.shape[1]

    def mm(a, b):
        return jnp.dot(a.astype(compute_dtype), b.astype(compute_dtype),
                       preferred_element_type=jnp.float32)

    # Hidden projection once per batch row (the PyTorch module repeats `hidden`
    # S times before the Linear; algebraically identical, S x cheaper).
    h_proj = mm(hid_ref[...], wh_ref[...])                          # (TB, Hd)

    # Encoder projection directly in the native (S, B, I) layout:
    # one lane-dense (S*TB, I) @ (I, Hd) MXU matmul.
    e_proj = mm(enc_ref[...].reshape(S * TB, I), we_ref[...])       # (S*TB, Hd)

    feat = jnp.tanh(e_proj.reshape(S, TB, Hd)
                    + h_proj[None, :, :]
                    + ba_ref[...])                                  # (S, TB, Hd) f32

    # Score head: VPU multiply + XLU lane reduction over Hd (avoids TB
    # degenerate M=1 MXU matmuls / MRF drains).  The scalar score bias is a
    # softmax no-op (shift invariance) and is omitted.
    scores = jnp.sum(feat * v_ref[...], axis=-1)                    # (S, TB)

    # masked_fill_(-1e12) semantics (any nonzero mask value masks), then
    # softmax over the sequence axis (axis 0 in this layout).
    scores = jnp.where(mask_ref[...] != 0.0, jnp.float32(-1e12), scores)
    m = jnp.max(scores, axis=0, keepdims=True)
    e = jnp.exp(scores - m)
    out_ref[...] = (e / jnp.sum(e, axis=0, keepdims=True)).astype(out_ref.dtype)


def _round_up(x, m):
    return ((x + m - 1) // m) * m


def _choose_batch_tiling(B, S, I, H, Hd, batch_tile, vmem_budget_bytes):
    """Pick (Bp, TB, vmem_estimate).

    Keeps the (S, TB) mask/output blocks legal: their last block dim must be
    a multiple of 128 or span the full (padded) batch.
    """
    Bp = _round_up(max(B, 1), 8)

    def est(tb):
        f32 = 4
        enc = 2 * S * tb * I * f32                       # double-buffered encoder block
        small = 2 * (tb * H + 2 * S * tb) * f32          # hidden / mask / out blocks
        weights = 2 * (H * Hd + I * Hd + 2 * Hd) * f32   # VMEM-resident weights
        interm = 3 * S * tb * max(Hd, 128) * f32         # e_proj / feat / scratch vregs
        return enc + small + weights + interm

    if Bp < 256:
        # Small batch: one grid step; block spans the whole padded batch, so
        # the 128-lane divisibility constraint is waived (block == full dim).
        return Bp, Bp, est(Bp)

    # Large batch: 128-multiple tiles, >= 2 grid steps (v7x has 2 TensorCores),
    # shrunk until the per-step working set fits the VMEM budget.
    tb = max(128, (min(batch_tile, Bp // 2) // 128) * 128)
    while tb > 128 and est(tb) > vmem_budget_bytes:
        tb -= 128
    Bp = _round_up(Bp, tb)
    return Bp, tb, est(tb)


def tree_attn_forward(hidden, encoder_outputs, params, seq_mask=None,
                      *, batch_tile=256, compute_dtype=jnp.float32,
                      vmem_budget_bytes=40 * 1024 * 1024):
    """
    hidden:          (1, B, hidden_size)
    encoder_outputs: (S, B, input_size)  -- consumed in this native layout
    seq_mask:        optional (B, S); any nonzero value marks a masked position
    params:          wh (H, Hd), we (I, Hd), ba (1, Hd), v (1, Hd)
                     (the scalar score bias c is a softmax no-op; unused here)
    returns:         (B, 1, S) attention weights (softmax over S)
    """
    S, B, I = encoder_outputs.shape
    H = hidden.shape[-1]
    Hd = params["wh"].shape[1]

    Bp, TB, vmem_est = _choose_batch_tiling(B, S, I, H, Hd,
                                            batch_tile, vmem_budget_bytes)

    # Only the tiny tensors get re-laid-out in the wrapper; encoder_outputs is
    # passed through untouched (padded along batch only if B isn't tile-aligned).
    hid2d = jnp.pad(hidden.reshape(B, H), ((0, Bp - B), (0, 0)))
    if seq_mask is None:
        mask_t = jnp.zeros((S, Bp), jnp.float32)
    else:
        mask_t = jnp.pad(jnp.transpose(seq_mask.astype(jnp.float32)),
                         ((0, 0), (0, Bp - B)))
    enc = encoder_outputs
    if Bp != B:
        enc = jnp.pad(enc, ((0, 0), (0, Bp - B), (0, 0)))

    grid = (Bp // TB,)

    # Grid-invariant block index -> weights stay resident in VMEM across steps.
    # (pipeline_mode=pl.Buffered(1) could reclaim their double buffer; the
    #  weights are tiny relative to the encoder block, so it is skipped.)
    def rep(shp):
        return pl.BlockSpec(shp, lambda b: tuple(0 for _ in shp))

    in_specs = [
        pl.BlockSpec((TB, H), lambda b: (b, 0)),          # hidden
        pl.BlockSpec((S, TB, I), lambda b: (0, b, 0)),    # encoder outputs (native layout)
        pl.BlockSpec((S, TB), lambda b: (0, b)),          # mask (seq-major)
        rep((H, Hd)),                                     # wh
        rep((I, Hd)),                                     # we
        rep((1, Hd)),                                     # ba
        rep((1, Hd)),                                     # v (score weight)
    ]
    out_specs = pl.BlockSpec((S, TB), lambda b: (0, b))
    out_shape = jax.ShapeDtypeStruct((S, Bp), jnp.float32)

    flops = 2 * Bp * H * Hd + 2 * S * Bp * I * Hd + 2 * S * Bp * Hd
    transcendentals = S * Bp * Hd + S * Bp
    bytes_accessed = 4 * (Bp * H + S * Bp * I + 2 * S * Bp
                          + H * Hd + I * Hd + 2 * Hd)

    vmem_limit = int(min(max(int(vmem_est * 1.5), 32 * 1024 * 1024),
                         100 * 1024 * 1024))

    attn = pl.pallas_call(
        functools.partial(_tree_attn_kernel, compute_dtype=compute_dtype),
        grid=grid,
        in_specs=in_specs,
        out_specs=out_specs,
        out_shape=out_shape,
        compiler_params=pltpu.CompilerParams(
            dimension_semantics=("parallel",),
            vmem_limit_bytes=vmem_limit),
        cost_estimate=pl.CostEstimate(flops=flops,
                                      transcendentals=transcendentals,
                                      bytes_accessed=bytes_accessed),
    )(hid2d, enc, mask_t,
      params["wh"], params["we"], params["ba"], params["v"])

    # Tiny output relayout only: (S, Bp) -> (B, 1, S).
    return jnp.transpose(attn[:, :B])[:, None, :]


def init_params(key, input_size, hidden_size):
    """nn.Linear-style init; attn weight stored transposed and split along its
    input axis into the hidden part (wh) and the encoder part (we)."""
    H, I, Hd = hidden_size, input_size, hidden_size
    k1, k2, k3, k4, k5 = jax.random.split(key, 5)
    ka = 1.0 / float(jnp.sqrt(jnp.float32(H + I)))
    ks = 1.0 / float(jnp.sqrt(jnp.float32(Hd)))
    return {
        "wh": jax.random.uniform(k1, (H, Hd), jnp.float32, -ka, ka),
        "we": jax.random.uniform(k2, (I, Hd), jnp.float32, -ka, ka),
        "ba": jax.random.uniform(k3, (1, Hd), jnp.float32, -ka, ka),
        "v":  jax.random.uniform(k4, (1, Hd), jnp.float32, -ks, ks),
        "c":  jax.random.uniform(k5, (1,), jnp.float32, -ks, ks),
    }


def reference_forward(hidden, encoder_outputs, params, seq_mask=None):
    """Pure-JAX mirror of TreeAttn.forward (PyTorch semantics, includes c)."""
    S, B, I = encoder_outputs.shape
    H = hidden.shape[-1]
    hid = jnp.broadcast_to(hidden, (S, B, H))                       # hidden.repeat(S,1,1)
    energy_in = jnp.concatenate([hid, encoder_outputs], axis=2).reshape(S * B, H + I)
    w_attn = jnp.concatenate([params["wh"], params["we"]], axis=0)  # (H+I, Hd)
    feat = jnp.tanh(jnp.dot(energy_in, w_attn,
                            precision=jax.lax.Precision.HIGHEST) + params["ba"])
    scores = jnp.dot(feat, params["v"].T,
                     precision=jax.lax.Precision.HIGHEST) + params["c"]
    attn = scores.reshape(S, B).T                                   # (B, S)
    if seq_mask is not None:
        attn = jnp.where(seq_mask.astype(bool), jnp.float32(-1e12), attn)
    return jax.nn.softmax(attn, axis=1)[:, None, :]                 # (B, 1, S)


if __name__ == "__main__":
    B, S = 3, 10
    INPUT_SIZE = 32
    HIDDEN_SIZE = 32

    key = jax.random.PRNGKey(0)
    k_h, k_e, k_p = jax.random.split(key, 3)
    hidden = jax.random.normal(k_h, (1, B, HIDDEN_SIZE), jnp.float32)
    encoder_outputs = jax.random.normal(k_e, (S, B, INPUT_SIZE), jnp.float32)
    # sequence-length style mask: 1 marks padded/masked positions
    lengths = jnp.array([10, 7, 4], jnp.int32)
    seq_mask = (jnp.arange(S)[None, :] >= lengths[:, None]).astype(jnp.float32)

    params = init_params(k_p, INPUT_SIZE, HIDDEN_SIZE)

    out = tree_attn_forward(hidden, encoder_outputs, params, seq_mask)
    jax.block_until_ready(out)

    ref = reference_forward(hidden, encoder_outputs, params, seq_mask)
    assert out.shape == (B, 1, S)
    assert jnp.allclose(out, ref, atol=1e-4, rtol=1e-4), float(jnp.max(jnp.abs(out - ref)))
    assert jnp.allclose(jnp.sum(out, axis=-1), 1.0, atol=1e-5)

    # Second config: no mask, batch not a multiple of 8 (exercises batch padding).
    B2, S2 = 12, 7
    k_h2, k_e2 = jax.random.split(jax.random.PRNGKey(1))
    hidden2 = jax.random.normal(k_h2, (1, B2, HIDDEN_SIZE), jnp.float32)
    enc2 = jax.random.normal(k_e2, (S2, B2, INPUT_SIZE), jnp.float32)
    out2 = tree_attn_forward(hidden2, enc2, params, None)
    jax.block_until_ready(out2)
    ref2 = reference_forward(hidden2, enc2, params, None)
    assert out2.shape == (B2, 1, S2)
    assert jnp.allclose(out2, ref2, atol=1e-4, rtol=1e-4), float(jnp.max(jnp.abs(out2 - ref2)))

    print("KERNEL_OK")
</pallas_src>

<mosaic_0001>
module attributes {stable_mosaic.version = 11 : i64} {
  func.func @_tree_attn_kernel(%arg0: i32, %arg1: memref<8x32xf32, #tpu.memory_space<vmem>>, %arg2: memref<10x8x32xf32, #tpu.memory_space<vmem>>, %arg3: memref<10x8xf32, #tpu.memory_space<vmem>>, %arg4: memref<32x32xf32, #tpu.memory_space<vmem>>, %arg5: memref<32x32xf32, #tpu.memory_space<vmem>>, %arg6: memref<1x32xf32, #tpu.memory_space<vmem>>, %arg7: memref<1x32xf32, #tpu.memory_space<vmem>>, %arg8: memref<10x8xf32, #tpu.memory_space<vmem>>) attributes {dimension_semantics = [#tpu.dimension_semantics<parallel>], iteration_bounds = array<i64: 1>, scalar_prefetch = 0 : i64, scratch_operands = 0 : i64, tpu.core_type = #tpu.core_type<tc>, window_params = [{transform_indices = @transform_0, window_bounds = array<i64: 8, 32>}, {transform_indices = @transform_1, window_bounds = array<i64: 10, 8, 32>}, {transform_indices = @transform_2, window_bounds = array<i64: 10, 8>}, {pipeline_mode = #tpu.pipeline_mode<synchronous>, transform_indices = @transform_3, window_bounds = array<i64: 32, 32>}, {pipeline_mode = #tpu.pipeline_mode<synchronous>, transform_indices = @transform_4, window_bounds = array<i64: 32, 32>}, {pipeline_mode = #tpu.pipeline_mode<synchronous>, transform_indices = @transform_5, window_bounds = array<i64: 1, 32>}, {pipeline_mode = #tpu.pipeline_mode<synchronous>, transform_indices = @transform_6, window_bounds = array<i64: 1, 32>}, {transform_indices = @transform_7, window_bounds = array<i64: 10, 8>}]} {
    %c0 = arith.constant 0 : index
    %c0_0 = arith.constant 0 : index
    %0 = vector.load %arg1[%c0, %c0_0] : memref<8x32xf32, #tpu.memory_space<vmem>>, vector<8x32xf32>
    %c0_1 = arith.constant 0 : index
    %c0_2 = arith.constant 0 : index
    %1 = vector.load %arg4[%c0_1, %c0_2] : memref<32x32xf32, #tpu.memory_space<vmem>>, vector<32x32xf32>
    %cst = arith.constant dense<0.000000e+00> : vector<8x32xf32>
    %2 = tpu.matmul %0, %1, %cst {dimension_numbers = #tpu.dot_dimension_numbers<[1], [0], [0], [1], [0, 0, 1, 1], [], []>} : vector<8x32xf32>, vector<32x32xf32>, vector<8x32xf32> -> vector<8x32xf32>
    %c0_3 = arith.constant 0 : index
    %c0_4 = arith.constant 0 : index
    %c0_5 = arith.constant 0 : index
    %3 = vector.load %arg2[%c0_3, %c0_4, %c0_5] : memref<10x8x32xf32, #tpu.memory_space<vmem>>, vector<10x8x32xf32>
    %4 = vector.shape_cast %3 : vector<10x8x32xf32> to vector<80x32xf32>
    %c0_6 = arith.constant 0 : index
    %c0_7 = arith.constant 0 : index
    %5 = vector.load %arg5[%c0_6, %c0_7] : memref<32x32xf32, #tpu.memory_space<vmem>>, vector<32x32xf32>
    %cst_8 = arith.constant dense<0.000000e+00> : vector<80x32xf32>
    %6 = tpu.matmul %4, %5, %cst_8 {dimension_numbers = #tpu.dot_dimension_numbers<[1], [0], [0], [1], [0, 0, 1, 1], [], []>} : vector<80x32xf32>, vector<32x32xf32>, vector<80x32xf32> -> vector<80x32xf32>
    %7 = vector.shape_cast %6 : vector<80x32xf32> to vector<10x8x32xf32>
    %8 = vector.shape_cast %2 : vector<8x32xf32> to vector<1x8x32xf32>
    %9 = vector.broadcast %8 : vector<1x8x32xf32> to vector<10x8x32xf32>
    %10 = arith.addf %7, %9 : vector<10x8x32xf32>
    %c0_9 = arith.constant 0 : index
    %c0_10 = arith.constant 0 : index
    %11 = vector.load %arg6[%c0_9, %c0_10] : memref<1x32xf32, #tpu.memory_space<vmem>>, vector<1x32xf32>
    %12 = vector.shape_cast %11 : vector<1x32xf32> to vector<1x1x32xf32>
    %13 = vector.broadcast %12 : vector<1x1x32xf32> to vector<10x8x32xf32>
    %14 = arith.addf %10, %13 : vector<10x8x32xf32>
    %15 = math.tanh %14 : vector<10x8x32xf32>
    %c0_11 = arith.constant 0 : index
    %c0_12 = arith.constant 0 : index
    %16 = vector.load %arg7[%c0_11, %c0_12] : memref<1x32xf32, #tpu.memory_space<vmem>>, vector<1x32xf32>
    %17 = vector.shape_cast %16 : vector<1x32xf32> to vector<1x1x32xf32>
    %18 = vector.broadcast %17 : vector<1x1x32xf32> to vector<10x8x32xf32>
    %19 = arith.mulf %15, %18 : vector<10x8x32xf32>
    %cst_13 = arith.constant dense<0.000000e+00> : vector<10x8xf32>
    %20 = vector.multi_reduction <add>, %19, %cst_13 [2] : vector<10x8x32xf32> to vector<10x8xf32>
    %c0_14 = arith.constant 0 : index
    %c0_15 = arith.constant 0 : index
    %21 = vector.load %arg3[%c0_14, %c0_15] : memref<10x8xf32, #tpu.memory_space<vmem>>, vector<10x8xf32>
    %cst_16 = arith.constant 0.000000e+00 : f32
    %22 = vector.broadcast %cst_16 : f32 to vector<10x8xf32>
    %23 = arith.cmpf one, %21, %22 : vector<10x8xf32>
    %cst_17 = arith.constant -9.99999995E+11 : f32
    %24 = vector.broadcast %cst_17 : f32 to vector<10x8xf32>
    %25 = arith.select %23, %24, %20 : vector<10x8xi1>, vector<10x8xf32>
    %cst_18 = arith.constant dense<0xFF800000> : vector<8xf32>
    %26 = vector.multi_reduction <maximumf>, %25, %cst_18 [0] : vector<10x8xf32> to vector<8xf32>
    %27 = vector.shape_cast %26 : vector<8xf32> to vector<1x8xf32>
    %28 = vector.broadcast %27 : vector<1x8xf32> to vector<10x8xf32>
    %29 = arith.subf %25, %28 : vector<10x8xf32>
    %30 = math.exp %29 : vector<10x8xf32>
    %cst_19 = arith.constant dense<0.000000e+00> : vector<8xf32>
    %31 = vector.multi_reduction <add>, %30, %cst_19 [0] : vector<10x8xf32> to vector<8xf32>
    %32 = vector.shape_cast %31 : vector<8xf32> to vector<1x8xf32>
    %33 = vector.broadcast %32 : vector<1x8xf32> to vector<10x8xf32>
    %34 = arith.divf %30, %33 : vector<10x8xf32>
    %c0_20 = arith.constant 0 : index
    %c0_21 = arith.constant 0 : index
    %35 = vector.load %arg8[%c0_20, %c0_21] : memref<10x8xf32, #tpu.memory_space<vmem>>, vector<10x8xf32>
    tpu.vector_store %arg8[%c0_20, %c0_21], %34 {strides = array<i32>} : memref<10x8xf32, #tpu.memory_space<vmem>>, vector<10x8xf32>,
    return
  }
  func.func @transform_0(%arg0: i32) -> (i32, i32) {
    %c0_i32 = arith.constant 0 : i32
    %c0_i32_0 = arith.constant 0 : i32
    return %arg0, %c0_i32 : i32, i32
  }
  func.func @transform_1(%arg0: i32) -> (i32, i32, i32) {
    %c0_i32 = arith.constant 0 : i32
    %c0_i32_0 = arith.constant 0 : i32
    %c0_i32_1 = arith.constant 0 : i32
    return %c0_i32, %arg0, %c0_i32_0 : i32, i32, i32
  }
  func.func @transform_2(%arg0: i32) -> (i32, i32) {
    %c0_i32 = arith.constant 0 : i32
    %c0_i32_0 = arith.constant 0 : i32
    return %c0_i32, %arg0 : i32, i32
  }
  func.func @transform_3(%arg0: i32) -> (i32, i32) {
    %c0_i32 = arith.constant 0 : i32
    %c0_i32_0 = arith.constant 0 : i32
    %c0_i32_1 = arith.constant 0 : i32
    return %c0_i32, %c0_i32_0 : i32, i32
  }
  func.func @transform_4(%arg0: i32) -> (i32, i32) {
    %c0_i32 = arith.constant 0 : i32
    %c0_i32_0 = arith.constant 0 : i32
    %c0_i32_1 = arith.constant 0 : i32
    return %c0_i32, %c0_i32_0 : i32, i32
  }
  func.func @transform_5(%arg0: i32) -> (i32, i32) {
    %c0_i32 = arith.constant 0 : i32
    %c0_i32_0 = arith.constant 0 : i32
    %c0_i32_1 = arith.constant 0 : i32
    return %c0_i32, %c0_i32_0 : i32, i32
  }
  func.func @transform_6(%arg0: i32) -> (i32, i32) {
    %c0_i32 = arith.constant 0 : i32
    %c0_i32_0 = arith.constant 0 : i32
    %c0_i32_1 = arith.constant 0 : i32
    return %c0_i32, %c0_i32_0 : i32, i32
  }
  func.func @transform_7(%arg0: i32) -> (i32, i32) {
    %c0_i32 = arith.constant 0 : i32
    %c0_i32_0 = arith.constant 0 : i32
    return %c0_i32, %arg0 : i32, i32
  }
}

</mosaic_0001>

<bundles_post_ra>
// kernel: tpu_custom_call.1
= control target key start
LH: loop header
LB: loop body
LE: loop exit
PB: predicated region body
PF: predicated region fallthrough
CT: control target
= control target key end

     0   :  { %12 = vsyncpa [#allocation3], 0  ;;  %s836_s0 = inlined_call_operand.hbm [shape: f32[8,32], index: 0, kind: input, shape index: {}]   ;;  %s837_s1 = inlined_call_operand.hbm [shape: f32[10,8,32], index: 1, kind: input, shape index: {}]   ;;  %s838_s2 = inlined_call_operand.vmem [shape: f32[10,8], index: 2, kind: input, shape index: {}]   ;;  %s839_s3 = inlined_call_operand.vmem [shape: f32[32,32], index: 3, kind: input, shape index: {}]   ;;  %s840_s4 = inlined_call_operand.hbm [shape: f32[32,32], index: 4, kind: input, shape index: {}]   ;;  %s841_s5 = inlined_call_operand.vmem [shape: f32[1,32], index: 5, kind: input, shape index: {}]   ;;  %s842_s6 = inlined_call_operand.vmem [shape: f32[1,32], index: 6, kind: input, shape index: {}]   ;;  %s843_s7 = inlined_call_operand.vmem [shape: f32[10,8], index: 7, kind: output, shape index: {}]  }
   0x1   :  { %13 = vsyncpa [#allocation5], 0  ;;  %s687_s24 = smov [#allocation4]   ;;  %s617_s28 = scalar_lea.hbm %s837_s1, 1280 }
   0x2   :  { %s29_s25 = sshll.u32 %s687_s24, 4  ;;  %p618_p0 = scmp.ne.s32.totalorder %s837_s1, %s617_s28  ;;  %s30_s25 = int_to_ptr.vmem [resolvable:$true] %s29_s25 }
   0x3   :  { %p621_p1 = scmp.lt.u32.totalorder %s617_s28, %s837_s1 }
   0x5   :  { %p623_p2 = pnand %p621_p1, %p618_p0 }
   0x7   :  { %626 = shalt.err (!%p623_p2)
}
   0x8   :  { %s627_s10 = scalar_lea.vmem %s30_s25, 1280  ;;  %p632_p4 = scmp.lt.s32.totalorder %s30_s25, %s30_s25 }
   0x9   :  { %p628_p3 = scmp.ne.s32.totalorder %s30_s25, %s627_s10  ;;  %p633_p5 = scmp.lt.s32.totalorder %s627_s10, %s627_s10 }
   0xb   :  { %p634_p6 = por %p633_p5, %p632_p4 }
   0xd   :  { %p635_p7 = pnand %p634_p6, %p628_p3 }
   0xf   :  { %638 = shalt.err (!%p635_p7)
}
  0x10   :  { %s688_s11 = smov 128   ;;  %s689_s12 = smov 8  }
  0x11   :  { %35 = dma.hbm_to_vmem [thread:$0]  %s837_s1, 1280, %s30_s25, [#allocation5], %s688_s11, %s688_s11, %s689_s12  }
  0x12   :  { %s690_s15 = smov [#allocation2]   ;;  %s691_s17 = smov [#allocation6]  }
  0x13   :  { %s20_s16 = sshll.u32 %s690_s15, 4  ;;  %s45_s18 = sshll.u32 %s691_s17, 4  ;;  %s21_s16 = int_to_ptr.vmem [resolvable:$true] %s20_s16  ;;  %s46_s18 = int_to_ptr.vmem [resolvable:$true] %s45_s18 }
  0x14   :  { %s639_s21 = scalar_lea.hbm %s836_s0, 128 }
  0x15   :  { %p640_p8 = scmp.ne.s32.totalorder %s836_s0, %s639_s21  ;;  %p643_p9 = scmp.lt.u32.totalorder %s639_s21, %s836_s0 }
  0x17   :  { %p645_p10 = pnand %p643_p9, %p640_p8 }
  0x19   :  { %648 = shalt.err (!%p645_p10)
}
  0x1a   :  { %s649_s1 = scalar_lea.vmem %s21_s16, 128  ;;  %p654_p12 = scmp.lt.s32.totalorder %s21_s16, %s21_s16 }
  0x1b   :  { %p650_p11 = scmp.ne.s32.totalorder %s21_s16, %s649_s1  ;;  %p655_p13 = scmp.lt.s32.totalorder %s649_s1, %s649_s1 }
  0x1d   :  { %p656_p0 = por %p655_p13, %p654_p12 }
  0x1f   :  { %p657_p1 = pnand %p656_p0, %p650_p11 }
  0x21   :  { %660 = shalt.err (!%p657_p1)
}
  0x22   :  { %23 = dma.hbm_to_vmem [thread:$0]  %s836_s0, 128, %s21_s16, [#allocation3]  }
  0x23   :  { %s661_s30 = scalar_lea.hbm %s840_s4, 512 }
  0x24   :  { %p662_p2 = scmp.ne.s32.totalorder %s840_s4, %s661_s30  ;;  %p665_p3 = scmp.lt.u32.totalorder %s661_s30, %s840_s4 }
  0x26   :  { %p667_p4 = pnand %p665_p3, %p662_p2 }
  0x28   :  { %670 = shalt.err (!%p667_p4)
}
  0x29   :  { %s671_s14 = scalar_lea.vmem %s46_s18, 512  ;;  %p676_p6 = scmp.lt.s32.totalorder %s46_s18, %s46_s18 }
  0x2a   :  { %p672_p5 = scmp.ne.s32.totalorder %s46_s18, %s671_s14  ;;  %p677_p7 = scmp.lt.s32.totalorder %s671_s14, %s671_s14 }
  0x2c   :  { %p678_p8 = por %p677_p7, %p676_p6 }
  0x2e   :  { %p679_p9 = pnand %p678_p8, %p672_p5 }
  0x30   :  { %682 = shalt.err (!%p679_p9)
}
  0x31   :  { %51 = dma.hbm_to_vmem [thread:$0]  %s840_s4, 512, %s46_s18, [#allocation5], %s688_s11, %s688_s11, %s689_s12  }
  0x32   :  { %683 = dma.done.wait [#allocation3], 128  }
  0x33   :  { %684 = vsyncadd [#allocation3], 4294967168 }
  0x34   :  { %685 = dma.done.wait [#allocation5], 1792  }
  0x35   :  { %686 = vsyncadd [#allocation5], 4294965504  ;;  %v692_v0 = vmov 0.0|0.0   ;;  %vm693_vm0 = vmmov 0   ;;  %v694_v1 = vmov 0.0   ;;  %v66_v2 = vld [vmem:[%s839_s3] sm:$0xff] }
  0x36   :  { %565 = vmatprep.subr.bf16.mxu0 %v692_v0  ;;  %539 = vmatprep.mubr.msk.f32.mxu0 %vm693_vm0, %v694_v1  ;;  %v67_v3 = vld [vmem:[%s839_s3 + $0x8] sm:$0xff]  ;;  %v154_v4 = vld [vmem:[#allocation6] sm:$0xff]  ;;  %vm70_vm1 = vcmask 261120   ;;  %v155_v6 = vld [vmem:[#allocation6 + $0x8] sm:$0xff]  ;;  %vm443_vm2 = vcmask 1041409   ;;  %vm445_vm3 = vcmask 1042434  }
  0x37   :  { %v566_v5 = vpack.c.bf16 %v67_v3, %v66_v2  ;;  %v68_v7 = vld [vmem:[%s839_s3 + $0x10] sm:$0xff]  ;;  %v69_v8 = vld [vmem:[%s839_s3 + $0x18] sm:$0xff]  ;;  %v571_v9 = vpack.c.bf16 %v155_v6, %v154_v4  ;;  %v156_v10 = vld [vmem:[#allocation6 + $0x10] sm:$0xff]  ;;  %vm447_vm4 = vcmask 1043459   ;;  %vm449_vm5 = vcmask 1044484  }
  0x38   :  { %v157_v11 = vld [vmem:[#allocation6 + $0x18] sm:$0xff]  ;;  %v146_v12 = vld [vmem:[#allocation4 + $0x10] sm:$0xff]  ;;  %v569_v13 = vpack.c.bf16 %v69_v8, %v68_v7  ;;  %v65_v15 = vld [vmem:[#allocation2] sm:$0xff]  ;;  %vm451_vm6 = vcmask 1045509   ;;  %vm453_vm7 = vcmask 1046534   ;;  %vm455_vm8 = vcmask 1047559  }
  0x39   :  { %567 = vmatpush3.bf16.msra.mxu0 %v566_v5  ;;  %v575_v14 = vpack.c.bf16 %v157_v11, %v156_v10  ;;  %553 = vmatprep.mubr.msk.f32.mxu1 %vm70_vm1, %v146_v12  ;;  %v144_v16 = vld [vmem:[#allocation4] sm:$0xff]  ;;  %v147_v17 = vld [vmem:[#allocation4 + $0x18] sm:$0xff]  ;;  %v149_v19 = vld [vmem:[#allocation4 + $0x28] sm:$0xff]  ;;  %vm462_vm11 = vcmask 64512   ;;  %vm464_vm12 = vcmask 58368  }
  0x3a   :  { %579 = vmatprep.subr.bf16.mxu1 %v571_v9  ;;  %568 = vmatprep.subr.bf16.mxu0 %v692_v0  ;;  %v148_v18 = vld [vmem:[#allocation4 + $0x20] sm:$0xff]  ;;  %v150_v20 = vld [vmem:[#allocation4 + $0x30] sm:$0xff]  ;;  %v145_v21 = vld [vmem:[#allocation4 + $0x8] sm:$0xff] }
  0x3b   :  { %581 = vmatpush3.bf16.msra.mxu1 %v571_v9  ;;  %v151_v22 = vld [vmem:[#allocation4 + $0x38] sm:$0xff]  ;;  %v152_v23 = vld [vmem:[#allocation4 + $0x40] sm:$0xff]  ;;  %v153_v24 = vld [vmem:[#allocation4 + $0x48] sm:$0xff] }
  0x3c   :  { %580 = vmatprep.subr.bf16.mxu1 %v575_v14  ;;  %v510_v28 = vld [vmem:[%s841_s5] ss:$0 sm:$0xff] }
  0x3d   :  { %570 = vmatpush3.bf16.msra.mxu0 %v569_v13  ;;  %v511_v54 = vld [vmem:[%s842_s6] ss:$0 sm:$0xff] }
  0x3e   :  { %572 = vmatprep.subr.bf16.mxu0 %v571_v9 }
  0x3f   :  { %582 = vmatpush3.bf16.msra.mxu1 %v575_v14 }
  0x40   :  { %540 = vmatmul.mubr.msk.f32.vlgmr.msra.gmra.mrb[0].mxu0 %vm70_vm1, %v65_v15 }
  0x41   :  { %574 = vmatpush3.bf16.msra.mxu0 %v571_v9  ;;  %550 = vmatprep.mubr.msk.f32.mxu0 %vm70_vm1, %v144_v16 }
  0x42   :  { %554 = vmatmul.mubr.msk.f32.vlgmr.msra.gmra.mrb[0].mxu1 %vm70_vm1, %v147_v17  ;;  %576 = vmatprep.subr.bf16.mxu0 %v575_v14 }
  0x43   :  { %556 = vmatprep.mubr.msk.f32.mxu1 %vm70_vm1, %v148_v18 }
  0x45   :  { %578 = vmatpush3.bf16.msra.mxu0 %v575_v14 }
  0x46   :  { %557 = vmatmul.mubr.msk.f32.gmra.mrb[2].mxu1 %vm70_vm1, %v149_v19 }
  0x47   :  { %559 = vmatprep.mubr.msk.f32.mxu1 %vm70_vm1, %v150_v20 }
  0x48   :  { %551 = vmatmul.mubr.msk.f32.vlgmr.msra.gmra.mrb[2].mxu0 %vm70_vm1, %v145_v21 }
  0x4a   :  { %560 = vmatmul.mubr.msk.f32.gmra.mrb[4].mxu1 %vm70_vm1, %v151_v22 }
  0x4b   :  { %562 = vmatprep.mubr.msk.f32.mxu1 %vm70_vm1, %v152_v23 }
  0x4e   :  { %563 = vmatmul.mubr.msk.f32.gmra.mrb[6].mxu1 %vm70_vm1, %v153_v24 }
 0x113   :  { %v140_v25 = vpop.f32.mrb[0].mxu0 }
 0x114   :  { %v541_v26 = vpop.f32.mrb[1].mxu0 }
 0x115   :  { %v555_v27 = vpop.f32.mrb[0].mxu1  ;;  %v401_v26 = vlaneseq }
 0x116   :  { %v306_v29 = vadd.f32 %v555_v27, %v140_v25  ;;  %v264_v30 = vpop.f32.mrb[1].mxu1 }
 0x117   :  { %v305_v31 = vadd.f32 %v264_v30, %v140_v25  ;;  %v404_v30 = vshrl.u32 %v401_v26, 7 }
 0x118   :  { %v323_v32 = vadd.f32 %v510_v28, %v306_v29  ;;  %v402_v29 = vand.u32 127, %v401_v26 }
 0x119   :  { %v322_v33 = vadd.f32 %v510_v28, %v305_v31  ;;  %v558_v34 = vpop.f32.mrb[2].mxu1 }
 0x11a   :  { %591 = vtanh.f32 %v323_v32  ;;  %v308_v35 = vadd.f32 %v558_v34, %v140_v25  ;;  %v274_v36 = vpop.f32.mrb[3].mxu1 }
 0x11b   :  { %593 = vtanh.f32 %v322_v33  ;;  %v307_v37 = vadd.f32 %v274_v36, %v140_v25  ;;  %v552_v38 = vpop.f32.mrb[2].mxu0  ;;  %v405_v33 = vsub.s32 %v402_v29, %v404_v30 }
 0x11c   :  { %v325_v39 = vadd.f32 %v510_v28, %v308_v35  ;;  %v304_v40 = vadd.f32 %v552_v38, %v140_v25  ;;  %v254_v41 = vpop.f32.mrb[3].mxu0 }
 0x11d   :  { %v324_v42 = vadd.f32 %v510_v28, %v307_v37  ;;  %v303_v43 = vadd.f32 %v254_v41, %v140_v25  ;;  %v561_v44 = vpop.f32.mrb[4].mxu1 }
 0x11e   :  { %595 = vtanh.f32 %v325_v39  ;;  %v321_v45 = vadd.f32 %v510_v28, %v304_v40  ;;  %v310_v46 = vadd.f32 %v561_v44, %v140_v25  ;;  %v284_v47 = vpop.f32.mrb[5].mxu1 }
 0x11f   :  { %597 = vtanh.f32 %v324_v42  ;;  %v320_v48 = vadd.f32 %v510_v28, %v303_v43  ;;  %v309_v49 = vadd.f32 %v284_v47, %v140_v25  ;;  %v387_v43 = vld [vmem:[%s838_s2] sm:$0xff] }
 0x120   :  { %599 = vtanh.f32 %v321_v45  ;;  %v327_v50 = vadd.f32 %v510_v28, %v310_v46  ;;  %vm389_vm9 = vcmp.ne.f32.partialorder %v387_v43, 0.0 }
 0x121   :  { %v564_v51 = vpop.f32.mrb[6].mxu1  ;;  %v326_v55 = vadd.f32 %v510_v28, %v309_v49 }
 0x122   :  { %601 = vtanh.f32 %v327_v50  ;;  %v312_v52 = vadd.f32 %v564_v51, %v140_v25  ;;  %v294_v53 = vpop.f32.mrb[7].mxu1  ;;  %v388_v50 = vld [vmem:[%s838_s2 + $0x8] sm:$0x3] }
 0x123   :  { %603 = vtanh.f32 %v320_v48  ;;  %v311_v56 = vadd.f32 %v294_v53, %v140_v25  ;;  %vm390_vm10 = vcmp.ne.f32.partialorder %v388_v50, 0.0 }
 0x124   :  { %v592_v57 = vpop.eup %591  ;;  %v329_v58 = vadd.f32 %v510_v28, %v312_v52 }
 0x125   :  { %v594_v59 = vpop.eup %593  ;;  %v350_v60 = vmul.f32 %v592_v57, %v511_v54  ;;  %v328_v61 = vadd.f32 %v510_v28, %v311_v56 }
 0x126   :  { %605 = vtanh.f32 %v329_v58  ;;  %v349_v63 = vmul.f32 %v594_v59, %v511_v54 }
 0x127   :  { %607 = vtanh.f32 %v326_v55  ;;  %v366_v62 = vsel %vm70_vm1, %v350_v60, 0.0 }
 0x128   :  { %v596_v0 = vpop.eup %595  ;;  %367 = vadd.xlane.f32.xlu1 %v366_v62  ;;  %609 = vtanh.f32 %v328_v61  ;;  %v363_v4 = vsel %vm70_vm1, %v349_v63, 0.0 }
 0x129   :  { %v598_v1 = vpop.eup %597  ;;  %v352_v5 = vmul.f32 %v596_v0, %v511_v54 }
 0x12a   :  { %v600_v2 = vpop.eup %599  ;;  %v351_v3 = vmul.f32 %v598_v1, %v511_v54 }
 0x12b   :  { %v348_v8 = vmul.f32 %v600_v2, %v511_v54  ;;  %v372_v10 = vsel %vm70_vm1, %v352_v5, 0.0 }
 0x12c   :  { %v602_v6 = vpop.eup %601  ;;  %364 = vadd.xlane.f32.xlu1 %v363_v4  ;;  %v369_v7 = vsel %vm70_vm1, %v351_v3, 0.0 }
 0x12d   :  { %v604_v9 = vpop.eup %603  ;;  %370 = vadd.xlane.f32.xlu0 %v369_v7  ;;  %v354_v11 = vmul.f32 %v602_v6, %v511_v54  ;;  %v360_v13 = vsel %vm70_vm1, %v348_v8, 0.0 }
 0x12e   :  { %v347_v14 = vmul.f32 %v604_v9, %v511_v54 }
 0x12f   :  { %v378_v16 = vsel %vm70_vm1, %v354_v11, 0.0 }
 0x130   :  { %v606_v12 = vpop.eup %605  ;;  %373 = vadd.xlane.f32.xlu1 %v372_v10  ;;  %v357_v18 = vsel %vm70_vm1, %v347_v14, 0.0 }
 0x131   :  { %v608_v15 = vpop.eup %607  ;;  %361 = vadd.xlane.f32.xlu0 %v360_v13  ;;  %v356_v17 = vmul.f32 %v606_v12, %v511_v54 }
 0x132   :  { %v353_v19 = vmul.f32 %v608_v15, %v511_v54  ;;  %v610_v20 = vpop.eup %609 }
 0x133   :  { %v384_v21 = vsel %vm70_vm1, %v356_v17, 0.0  ;;  %v355_v23 = vmul.f32 %v610_v20, %v511_v54 }
 0x134   :  { %379 = vadd.xlane.f32.xlu1 %v378_v16  ;;  %v375_v22 = vsel %vm70_vm1, %v353_v19, 0.0 }
 0x135   :  { %358 = vadd.xlane.f32.xlu0 %v357_v18  ;;  %v381_v24 = vsel %vm70_vm1, %v355_v23, 0.0 }
 0x138   :  { %385 = vadd.xlane.f32.xlu1 %v384_v21 }
 0x139   :  { %376 = vadd.xlane.f32.xlu0 %v375_v22 }
 0x13d   :  { %382 = vadd.xlane.f32.xlu0 %v381_v24 }
 0x1b5   :  { %v368_v25 = vpop.xlane.xlu1 %367 }
 0x1b6   :  { %v418_v39 = vrot.slane %v368_v25, %v405_v33 }
 0x1b9   :  { %v365_v27 = vpop.xlane.xlu1 %364 }
 0x1ba   :  { %v371_v28 = vpop.xlane.xlu0 %370  ;;  %v414_v38 = vrot.slane %v365_v27, %v405_v33 }
 0x1bb   :  { %v422_v41 = vrot.slane %v371_v28, %v405_v33 }
 0x1bd   :  { %v374_v31 = vpop.xlane.xlu1 %373 }
 0x1be   :  { %v362_v32 = vpop.xlane.xlu0 %361  ;;  %v426_v45 = vrot.slane %v374_v31, %v405_v33 }
 0x1bf   :  { %v410_v36 = vrot.slane %v362_v32, %v405_v33 }
 0x1c1   :  { %v380_v34 = vpop.xlane.xlu1 %379 }
 0x1c2   :  { %v359_v35 = vpop.xlane.xlu0 %358  ;;  %v434_v51 = vrot.slane %v380_v34, %v405_v33 }
 0x1c3   :  { %v406_v37 = vrot.slane %v359_v35, %v405_v33 }
 0x1c5   :  { %v444_v40 = vsel %vm443_vm2, %v410_v36, %v406_v37  ;;  %v386_v48 = vpop.xlane.xlu1 %385 }
 0x1c6   :  { %v446_v42 = vsel %vm445_vm3, %v414_v38, %v444_v40  ;;  %v377_v44 = vpop.xlane.xlu0 %376  ;;  %v442_v55 = vrot.slane %v386_v48, %v405_v33 }
 0x1c7   :  { %v448_v46 = vsel %vm447_vm4, %v418_v39, %v446_v42  ;;  %v430_v47 = vrot.slane %v377_v44, %v405_v33 }
 0x1c8   :  { %v450_v49 = vsel %vm449_vm5, %v422_v41, %v448_v46 }
 0x1c9   :  { %v452_v52 = vsel %vm451_vm6, %v426_v45, %v450_v49 }
 0x1ca   :  { %v454_v53 = vsel %vm453_vm7, %v430_v47, %v452_v52  ;;  %v383_v54 = vpop.xlane.xlu0 %382 }
 0x1cb   :  { %v456_v56 = vsel %vm455_vm8, %v434_v51, %v454_v53  ;;  %v438_v57 = vrot.slane %v383_v54, %v405_v33 }
 0x1cc   :  { %v460_v58 = vsel %vm389_vm9, -1e+12, %v456_v56 }
 0x1cd   :  { %v457_v59 = vsel %vm443_vm2, %v442_v55, %v438_v57  ;;  %v463_v61 = vsel %vm462_vm11, %v460_v58, -inf }
 0x1ce   :  { %v461_v60 = vsel %vm390_vm10, -1e+12, %v457_v59 }
 0x1cf   :  { %v465_v62 = vsel %vm464_vm12, %v461_v60, -inf }
 0x1d0   :  { %v466_v63 = vmax.f32 %v463_v61, %v465_v62 }
 0x1d2   :  { %v467_v0 = vrot.slane %v466_v63, 4 }
 0x1d4   :  { %v468_v1 = vmax.f32 %v466_v63, %v467_v0 }
 0x1d6   :  { %v469_v2 = vrot.slane %v468_v1, 2 }
 0x1d8   :  { %v470_v3 = vmax.f32 %v468_v1, %v469_v2 }
 0x1da   :  { %v471_v4 = vrot.slane %v470_v3, 1 }
 0x1dc   :  { %v472_v5 = vmax.f32 %v470_v3, %v471_v4 }
 0x1de   :  { %v473_v6 = vsub.f32 %v460_v58, %v472_v5  ;;  %v474_v7 = vsub.f32 %v461_v60, %v472_v5 }
 0x1e0   :  { %v475_v8 = vmul.f32 1.442695, %v473_v6  ;;  %v477_v9 = vmul.f32 1.442695, %v474_v7 }
 0x1e2   :  { %611 = vpow2.f32 %v475_v8 }
 0x1e3   :  { %613 = vpow2.f32 %v477_v9 }
 0x1ec   :  { %v612_v10 = vpop.eup %611 }
 0x1ed   :  { %v614_v11 = vpop.eup %613  ;;  %v479_v12 = vsel %vm462_vm11, %v612_v10, 0.0 }
 0x1ee   :  { %v480_v13 = vsel %vm464_vm12, %v614_v11, 0.0 }
 0x1ef   :  { %v481_v14 = vadd.f32 %v480_v13, %v479_v12 }
 0x1f1   :  { %v482_v15 = vrot.slane %v481_v14, 4 }
 0x1f3   :  { %v483_v16 = vadd.f32 %v482_v15, %v481_v14 }
 0x1f5   :  { %v484_v17 = vrot.slane %v483_v16, 2 }
 0x1f7   :  { %v485_v18 = vadd.f32 %v484_v17, %v483_v16 }
 0x1f9   :  { %v486_v19 = vrot.slane %v485_v18, 1 }
 0x1fb   :  { %v487_v20 = vadd.f32 %v486_v19, %v485_v18 }
 0x1fd   :  { %615 = vrcp.f32 %v487_v20 }
 0x207   :  { %v616_v21 = vpop.eup %615 }
 0x208   :  { %v489_v22 = vmul.f32 %v616_v21, %v612_v10  ;;  %v490_v23 = vmul.f32 %v616_v21, %v614_v11 }
 0x20a   :  { %491 = vst.msk [vmem:[%s843_s7] sm:$0xff] %vm462_vm11, %v489_v22 }
 0x20b   :  { %492 = vst.msk [vmem:[%s843_s7 + $0x8] sm:$0x3] %vm464_vm12, %v490_v23 }
 0x20c   :  { %497 = vsyncpa [#allocation3], 1 }
 0x20d   :  { %498 = vsyncpa [#allocation5], 1 }

</bundles_post_ra>
